<compile_context>
chip_gen: v7x
topology: tpu7x:2x2x1
jax: 0.10.0
libtpu: 0.0.40
codegen_flags: <defaults>
</compile_context>

<pallas_src>
import numpy as np
import jax
import jax.numpy as jnp
from jax.experimental import pallas as pl
from jax.experimental.pallas import tpu as pltpu

# ----- synthetic config (cfg.MODEL.*) -----
IMAGE_SIZE = 64                      # cfg.MODEL.IMAGE_SIZE[0]
PRE_STAGE_CHANNELS = (4, 8, 16, 32)  # hrnet.last_pre_stage_channels
STRIDES = (4, 8, 16, 32)             # HRNet branch output strides
MAX_BATCH_BLOCK = 32                 # max images processed per grid step


def _bilinear_matrix(out_size, in_size):
    """1-D bilinear interp matrix matching F.interpolate(mode='bilinear',
    align_corners=False)."""
    if in_size == 1:
        return np.ones((out_size, 1), np.float32)
    scale = in_size / out_size
    i = np.arange(out_size, dtype=np.float64)
    src = np.maximum((i + 0.5) * scale - 0.5, 0.0)
    i0 = np.minimum(np.floor(src).astype(np.int64), in_size - 1)
    i1 = np.minimum(i0 + 1, in_size - 1)
    frac = (src - i0).astype(np.float32)
    A = np.zeros((out_size, in_size), np.float32)
    A[np.arange(out_size), i0] += 1.0 - frac
    A[np.arange(out_size), i1] += frac
    return A


def _pick_batch_block(n):
    """Images per grid step: large enough to amortize per-step overhead, but
    always >= 2 grid steps (when n > 1) so v7x's two TensorCores both get work."""
    if n <= 1:
        return 1
    steps = max(2, -(-n // MAX_BATCH_BLOCK))
    return -(-n // steps)


def _make_kernel(B, S, chans, spatial):
    n_scales = len(chans)
    rows = [c * h for c, (h, _) in zip(chans, spatial)]   # ck*hk per scale
    inv_area = 1.0 / float(S * S)

    def kernel(f0_ref, f1_ref, f2_ref, f3_ref, ct_ref, wr_ref, scal_ref,
               xray_ref, cls_ref):
        f_refs = (f0_ref, f1_ref, f2_ref, f3_ref)

        # ---- stage 1: per scale, column resize straight to S output columns;
        #      batch + channels + feature rows folded into the matmul M dim ----
        u_parts = []
        for k in range(n_scales):
            _, wk = spatial[k]
            rk = rows[k]
            f2d = f_refs[k][...].reshape(B * rk, wk)       # leading-dim merge
            cmat = ct_ref[k][:wk, :]                       # (wk, S)
            u = jnp.dot(f2d, cmat,
                        preferred_element_type=jnp.float32)  # (B*rk, S)
            u_parts.append(u.reshape(B, rk, S))
        u_all = jnp.concatenate(u_parts, axis=1)           # (B, Ktot, S)

        # ---- stage 2: conv-weight-folded row resize, K = Ktot (=256) per
        #      image.  Even / odd output rows packed side by side so the
        #      result is a lane-dense (B, S/2, 2S) block (no value reshape). ----
        wr_even = wr_ref[0]                                # (S//2, Ktot)
        wr_odd = wr_ref[1]                                 # (S//2, Ktot)
        y_even, y_odd = [], []
        for b in range(B):
            ub = u_all[b]                                  # (Ktot, S)
            y_even.append(jnp.dot(wr_even, ub,
                                  preferred_element_type=jnp.float32))
            y_odd.append(jnp.dot(wr_odd, ub,
                                 preferred_element_type=jnp.float32))
        y = jnp.concatenate([jnp.stack(y_even, axis=0),
                             jnp.stack(y_odd, axis=0)], axis=2)  # (B, S/2, 2S)

        # conv bias (exact after the resize: bilinear rows sum to 1) + sigmoid
        y = jax.nn.sigmoid(y + scal_ref[0])
        xray_ref[...] = y.astype(xray_ref.dtype)

        # classification head: AvgPool2d(S) -> Linear(1,1) -> Sigmoid
        m = jnp.sum(y, axis=2, keepdims=True)              # (B, S/2, 1)
        m = jnp.sum(m, axis=1, keepdims=True) * inv_area   # (B, 1, 1)
        cls_ref[...] = jax.nn.sigmoid(m * scal_ref[1] + scal_ref[2]
                                      ).astype(cls_ref.dtype)

    return kernel


def xray_head_pallas(feats, conv_w, conv_b, lin_w, lin_b):
    n = int(feats[0].shape[0])
    chans = [int(f.shape[1]) for f in feats]
    spatial = [(int(f.shape[2]), int(f.shape[3])) for f in feats]
    S = IMAGE_SIZE
    h0, w0 = spatial[0]
    rows = [c * h for c, (h, _) in zip(chans, spatial)]
    k_tot = sum(rows)
    w_max = max(w for (_, w) in spatial)

    # ---- batch blocking ----
    B = _pick_batch_block(n)
    n_pad = -(-n // B) * B

    # ---- host: features to (n, ck*hk, wk) (contiguous per-image DMA);
    #      pad the batch to a multiple of B ----
    f_in = []
    for f, ck, (hk, wk) in zip(feats, chans, spatial):
        g = jnp.reshape(f, (n, ck * hk, wk))
        if n_pad != n:
            g = jnp.pad(g, ((0, n_pad - n), (0, 0), (0, 0)))
        f_in.append(g)

    # ---- host: precompose the two bilinear resizes per scale into one
    #      (S, hk) row matrix and one (S, wk) column matrix ----
    a_h_final = _bilinear_matrix(S, h0)
    a_w_final = _bilinear_matrix(S, w0)
    ct_np = np.zeros((len(chans), w_max, S), np.float32)
    r_mats = []
    for k, (hk, wk) in enumerate(spatial):
        rk_mat = a_h_final if k == 0 else a_h_final @ _bilinear_matrix(h0, hk)
        ck_mat = a_w_final if k == 0 else a_w_final @ _bilinear_matrix(w0, wk)
        r_mats.append(rk_mat)            # (S, hk)
        ct_np[k, :wk, :] = ck_mat.T      # (wk, S)
    ct = jnp.asarray(ct_np)              # (4, w_max, S), lane dim = S

    # ---- host: fold the 1x1-conv channel weights into the row matrices:
    #      WR[p, (k,c,h)] = conv_w[off_k + c] * R_k[p, h]; split even/odd p ----
    conv_w_f = jnp.asarray(conv_w, jnp.float32).reshape(-1)
    offs = np.concatenate([[0], np.cumsum(chans)]).astype(np.int64)
    wr_parts = []
    for k, (hk, wk) in enumerate(spatial):
        ck = chans[k]
        w_k = conv_w_f[int(offs[k]):int(offs[k]) + ck]                 # (ck,)
        blk = w_k[None, :, None] * jnp.asarray(r_mats[k])[:, None, :]  # (S,ck,hk)
        wr_parts.append(blk.reshape(S, ck * hk))
    wr = jnp.concatenate(wr_parts, axis=1)                 # (S, Ktot)
    wr_eo = jnp.stack([wr[0::2], wr[1::2]], axis=0)        # (2, S//2, Ktot)

    # ---- scalars (conv bias, linear weight/bias) in SMEM ----
    scal = jnp.concatenate([jnp.asarray(v, jnp.float32).reshape(1)
                            for v in (conv_b, lin_w, lin_b)])

    kernel = _make_kernel(B, S, chans, spatial)

    in_specs = (
        [pl.BlockSpec((B, rows[k], spatial[k][1]), lambda g: (g, 0, 0))
         for k in range(len(chans))]
        + [pl.BlockSpec((len(chans), w_max, S), lambda g: (0, 0, 0)),
           pl.BlockSpec((2, S // 2, k_tot), lambda g: (0, 0, 0)),
           pl.BlockSpec((3,), lambda g: (0,),
                        memory_space=pltpu.MemorySpace.SMEM)]
    )
    out_specs = (
        pl.BlockSpec((B, S // 2, 2 * S), lambda g: (g, 0, 0)),
        pl.BlockSpec((B, 1, 1), lambda g: (g, 0, 0)),
    )
    out_shape = (
        jax.ShapeDtypeStruct((n_pad, S // 2, 2 * S), jnp.float32),
        jax.ShapeDtypeStruct((n_pad, 1, 1), jnp.float32),
    )

    xray, cls = pl.pallas_call(
        kernel,
        grid=(n_pad // B,),
        in_specs=in_specs,
        out_specs=out_specs,
        out_shape=out_shape,
        compiler_params=pltpu.CompilerParams(
            dimension_semantics=("parallel",)),   # batch axis is independent
    )(*f_in, ct, wr_eo, scal)

    # (n_pad, S/2, 2S) has the same row-major layout as (n_pad, S, S):
    # element [i, r, j] is pixel (p, q) with p = 2r + j // S, q = j % S.
    xray = xray[:n].reshape(n, 1, S, S)
    cls = cls[:n].reshape(n)
    return xray, cls


def fake_hrnet_features(x, proj_weights):
    # TODO(synk): HRNet backbone (get_cls_net) is external and not translated;
    # deterministic stand-in producing the multi-scale pyramid the head expects.
    n, c, hh, ww = x.shape
    feats = []
    for wk, stride in zip(proj_weights, STRIDES):
        h, w = hh // stride, ww // stride
        pooled = x.reshape(n, c, h, stride, w, stride).mean(axis=(3, 5))
        feats.append(jnp.einsum('oc,nchw->nohw', wk, pooled))
    return feats


def xray_net_forward(x, params):
    feats = fake_hrnet_features(x, params["proj"])
    return xray_head_pallas(feats, params["conv_w"], params["conv_b"],
                            params["lin_w"], params["lin_b"])


def xray_head_reference(feats, conv_w, conv_b, lin_w, lin_b):
    """Pure-JAX reference following the original op order:
    upsample -> concat -> 1x1 conv -> upsample -> sigmoid -> avgpool -> linear -> sigmoid."""
    f0 = feats[0]
    n, _, h0, w0 = f0.shape
    S = IMAGE_SIZE
    hp = jax.lax.Precision.HIGHEST
    ups = [f0]
    for f in feats[1:]:
        ah = jnp.asarray(_bilinear_matrix(h0, int(f.shape[2])))
        aw = jnp.asarray(_bilinear_matrix(w0, int(f.shape[3])))
        ups.append(jnp.einsum('hi,wj,ncij->nchw', ah, aw, f, precision=hp))
    cat = jnp.concatenate(ups, axis=1)
    logits = jnp.einsum('nchw,c->nhw', cat, conv_w, precision=hp) + conv_b
    ahf = jnp.asarray(_bilinear_matrix(S, h0))
    awf = jnp.asarray(_bilinear_matrix(S, w0))
    m = jnp.einsum('sh,tw,nhw->nst', ahf, awf, logits, precision=hp)
    m = jax.nn.sigmoid(m)[:, None]          # (n, 1, S, S)
    pooled = m.mean(axis=(2, 3))            # (n, 1)
    c = jax.nn.sigmoid(pooled * lin_w + lin_b).reshape(-1)
    return m, c


if __name__ == "__main__":
    key = jax.random.PRNGKey(0)
    keys = jax.random.split(key, 10)

    # deterministic parameters (shapes per XRayNet.__init__)
    csum = sum(PRE_STAGE_CHANNELS)
    proj_weights = [0.1 * jax.random.normal(keys[1 + i], (ck, 3), jnp.float32)
                    for i, ck in enumerate(PRE_STAGE_CHANNELS)]         # stand-in backbone
    conv_w = 0.05 * jax.random.normal(keys[5], (csum,), jnp.float32)    # Conv2d(60,1,k=1).weight
    conv_b = jnp.float32(0.01)                                          # Conv2d bias
    lin_w = jnp.float32(1.5)                                            # Linear(1,1).weight
    lin_b = jnp.float32(-0.25)                                          # Linear(1,1).bias
    params = dict(proj=proj_weights, conv_w=conv_w, conv_b=conv_b,
                  lin_w=lin_w, lin_b=lin_b)

    # case 1: tiny batch (no padding); case 2: odd batch (padding + 2 grid steps)
    for n_img, xkey in ((4, keys[0]), (11, keys[6])):
        x = jax.random.normal(xkey, (n_img, 3, IMAGE_SIZE, IMAGE_SIZE),
                              jnp.float32)
        xray_map, cls_score = xray_net_forward(x, params)
        jax.block_until_ready(xray_map)
        jax.block_until_ready(cls_score)

        assert xray_map.shape == (n_img, 1, IMAGE_SIZE, IMAGE_SIZE)
        assert cls_score.shape == (n_img,)

        # cross-check the fused kernel against the original op-order reference
        feats = fake_hrnet_features(x, proj_weights)
        ref_map, ref_cls = xray_head_reference(feats, conv_w, conv_b,
                                               lin_w, lin_b)
        np.testing.assert_allclose(np.asarray(xray_map), np.asarray(ref_map),
                                   atol=2e-2, rtol=0)
        np.testing.assert_allclose(np.asarray(cls_score), np.asarray(ref_cls),
                                   atol=2e-2, rtol=0)

    print("KERNEL_OK")
</pallas_src>

<mosaic_0001>
module attributes {stable_mosaic.version = 11 : i64} {
  func.func @kernel(%arg0: i32, %arg1: memref<2x64x16xf32, #tpu.memory_space<vmem>>, %arg2: memref<2x64x8xf32, #tpu.memory_space<vmem>>, %arg3: memref<2x64x4xf32, #tpu.memory_space<vmem>>, %arg4: memref<2x64x2xf32, #tpu.memory_space<vmem>>, %arg5: memref<4x16x64xf32, #tpu.memory_space<vmem>>, %arg6: memref<2x32x256xf32, #tpu.memory_space<vmem>>, %arg7: memref<3xf32, #tpu.memory_space<smem>>, %arg8: memref<2x32x128xf32, #tpu.memory_space<vmem>>, %arg9: memref<2x1x1xf32, #tpu.memory_space<vmem>>) attributes {dimension_semantics = [#tpu.dimension_semantics<parallel>], iteration_bounds = array<i64: 2>, scalar_prefetch = 0 : i64, scratch_operands = 0 : i64, tpu.core_type = #tpu.core_type<tc>, window_params = [{transform_indices = @transform_0, window_bounds = array<i64: 2, 64, 16>}, {transform_indices = @transform_1, window_bounds = array<i64: 2, 64, 8>}, {transform_indices = @transform_2, window_bounds = array<i64: 2, 64, 4>}, {transform_indices = @transform_3, window_bounds = array<i64: 2, 64, 2>}, {pipeline_mode = #tpu.pipeline_mode<synchronous>, transform_indices = @transform_4, window_bounds = array<i64: 4, 16, 64>}, {pipeline_mode = #tpu.pipeline_mode<synchronous>, transform_indices = @transform_5, window_bounds = array<i64: 2, 32, 256>}, {transform_indices = @transform_6, window_bounds = array<i64: 3>}, {transform_indices = @transform_7, window_bounds = array<i64: 2, 32, 128>}, {transform_indices = @transform_8, window_bounds = array<i64: 2, 1, 1>}]} {
    %c0 = arith.constant 0 : index
    %c0_0 = arith.constant 0 : index
    %c0_1 = arith.constant 0 : index
    %0 = vector.load %arg1[%c0, %c0_0, %c0_1] : memref<2x64x16xf32, #tpu.memory_space<vmem>>, vector<2x64x16xf32>
    %1 = vector.shape_cast %0 : vector<2x64x16xf32> to vector<128x16xf32>
    %c0_2 = arith.constant 0 : index
    %c0_3 = arith.constant 0 : index
    %c0_4 = arith.constant 0 : index
    %2 = vector.load %arg5[%c0_2, %c0_3, %c0_4] : memref<4x16x64xf32, #tpu.memory_space<vmem>>, vector<1x16x64xf32>
    %3 = vector.shape_cast %2 : vector<1x16x64xf32> to vector<16x64xf32>
    %cst = arith.constant dense<0.000000e+00> : vector<128x64xf32>
    %4 = tpu.matmul %1, %3, %cst {dimension_numbers = #tpu.dot_dimension_numbers<[1], [0], [0], [1], [0, 0, 1, 1], [], []>} : vector<128x16xf32>, vector<16x64xf32>, vector<128x64xf32> -> vector<128x64xf32>
    %5 = vector.shape_cast %4 : vector<128x64xf32> to vector<2x64x64xf32>
    %c0_5 = arith.constant 0 : index
    %c0_6 = arith.constant 0 : index
    %c0_7 = arith.constant 0 : index
    %6 = vector.load %arg2[%c0_5, %c0_6, %c0_7] : memref<2x64x8xf32, #tpu.memory_space<vmem>>, vector<2x64x8xf32>
    %7 = vector.shape_cast %6 : vector<2x64x8xf32> to vector<128x8xf32>
    %c1 = arith.constant 1 : index
    %c0_8 = arith.constant 0 : index
    %c0_9 = arith.constant 0 : index
    %8 = vector.load %arg5[%c1, %c0_8, %c0_9] : memref<4x16x64xf32, #tpu.memory_space<vmem>>, vector<1x16x64xf32>
    %9 = vector.shape_cast %8 : vector<1x16x64xf32> to vector<16x64xf32>
    %10 = vector.extract_strided_slice %9 {offsets = [0, 0], sizes = [8, 64], strides = [1, 1]} : vector<16x64xf32> to vector<8x64xf32>
    %cst_10 = arith.constant dense<0.000000e+00> : vector<128x64xf32>
    %11 = tpu.matmul %7, %10, %cst_10 {dimension_numbers = #tpu.dot_dimension_numbers<[1], [0], [0], [1], [0, 0, 1, 1], [], []>} : vector<128x8xf32>, vector<8x64xf32>, vector<128x64xf32> -> vector<128x64xf32>
    %12 = vector.shape_cast %11 : vector<128x64xf32> to vector<2x64x64xf32>
    %c0_11 = arith.constant 0 : index
    %c0_12 = arith.constant 0 : index
    %c0_13 = arith.constant 0 : index
    %13 = vector.load %arg3[%c0_11, %c0_12, %c0_13] : memref<2x64x4xf32, #tpu.memory_space<vmem>>, vector<2x64x4xf32>
    %14 = vector.shape_cast %13 : vector<2x64x4xf32> to vector<128x4xf32>
    %c2 = arith.constant 2 : index
    %c0_14 = arith.constant 0 : index
    %c0_15 = arith.constant 0 : index
    %15 = vector.load %arg5[%c2, %c0_14, %c0_15] : memref<4x16x64xf32, #tpu.memory_space<vmem>>, vector<1x16x64xf32>
    %16 = vector.shape_cast %15 : vector<1x16x64xf32> to vector<16x64xf32>
    %17 = vector.extract_strided_slice %16 {offsets = [0, 0], sizes = [4, 64], strides = [1, 1]} : vector<16x64xf32> to vector<4x64xf32>
    %cst_16 = arith.constant dense<0.000000e+00> : vector<128x64xf32>
    %18 = tpu.matmul %14, %17, %cst_16 {dimension_numbers = #tpu.dot_dimension_numbers<[1], [0], [0], [1], [0, 0, 1, 1], [], []>} : vector<128x4xf32>, vector<4x64xf32>, vector<128x64xf32> -> vector<128x64xf32>
    %19 = vector.shape_cast %18 : vector<128x64xf32> to vector<2x64x64xf32>
    %c0_17 = arith.constant 0 : index
    %c0_18 = arith.constant 0 : index
    %c0_19 = arith.constant 0 : index
    %20 = vector.load %arg4[%c0_17, %c0_18, %c0_19] : memref<2x64x2xf32, #tpu.memory_space<vmem>>, vector<2x64x2xf32>
    %21 = vector.shape_cast %20 : vector<2x64x2xf32> to vector<128x2xf32>
    %c3 = arith.constant 3 : index
    %c0_20 = arith.constant 0 : index
    %c0_21 = arith.constant 0 : index
    %22 = vector.load %arg5[%c3, %c0_20, %c0_21] : memref<4x16x64xf32, #tpu.memory_space<vmem>>, vector<1x16x64xf32>
    %23 = vector.shape_cast %22 : vector<1x16x64xf32> to vector<16x64xf32>
    %24 = vector.extract_strided_slice %23 {offsets = [0, 0], sizes = [2, 64], strides = [1, 1]} : vector<16x64xf32> to vector<2x64xf32>
    %cst_22 = arith.constant dense<0.000000e+00> : vector<128x64xf32>
    %25 = tpu.matmul %21, %24, %cst_22 {dimension_numbers = #tpu.dot_dimension_numbers<[1], [0], [0], [1], [0, 0, 1, 1], [], []>} : vector<128x2xf32>, vector<2x64xf32>, vector<128x64xf32> -> vector<128x64xf32>
    %26 = vector.shape_cast %25 : vector<128x64xf32> to vector<2x64x64xf32>
    %27 = tpu.concatenate %5, %12, %19, %26 in 1 : vector<2x64x64xf32>, vector<2x64x64xf32>, vector<2x64x64xf32>, vector<2x64x64xf32> -> vector<2x256x64xf32>
    %c0_23 = arith.constant 0 : index
    %c0_24 = arith.constant 0 : index
    %c0_25 = arith.constant 0 : index
    %28 = vector.load %arg6[%c0_23, %c0_24, %c0_25] : memref<2x32x256xf32, #tpu.memory_space<vmem>>, vector<1x32x256xf32>
    %29 = vector.shape_cast %28 : vector<1x32x256xf32> to vector<32x256xf32>
    %c1_26 = arith.constant 1 : index
    %c0_27 = arith.constant 0 : index
    %c0_28 = arith.constant 0 : index
    %30 = vector.load %arg6[%c1_26, %c0_27, %c0_28] : memref<2x32x256xf32, #tpu.memory_space<vmem>>, vector<1x32x256xf32>
    %31 = vector.shape_cast %30 : vector<1x32x256xf32> to vector<32x256xf32>
    %32 = vector.extract_strided_slice %27 {offsets = [0, 0, 0], sizes = [1, 256, 64], strides = [1, 1, 1]} : vector<2x256x64xf32> to vector<1x256x64xf32>
    %33 = vector.shape_cast %32 : vector<1x256x64xf32> to vector<256x64xf32>
    %cst_29 = arith.constant dense<0.000000e+00> : vector<32x64xf32>
    %34 = tpu.matmul %29, %33, %cst_29 {dimension_numbers = #tpu.dot_dimension_numbers<[1], [0], [0], [1], [0, 0, 1, 1], [], []>} : vector<32x256xf32>, vector<256x64xf32>, vector<32x64xf32> -> vector<32x64xf32>
    %cst_30 = arith.constant dense<0.000000e+00> : vector<32x64xf32>
    %35 = tpu.matmul %31, %33, %cst_30 {dimension_numbers = #tpu.dot_dimension_numbers<[1], [0], [0], [1], [0, 0, 1, 1], [], []>} : vector<32x256xf32>, vector<256x64xf32>, vector<32x64xf32> -> vector<32x64xf32>
    %36 = vector.extract_strided_slice %27 {offsets = [1, 0, 0], sizes = [1, 256, 64], strides = [1, 1, 1]} : vector<2x256x64xf32> to vector<1x256x64xf32>
    %37 = vector.shape_cast %36 : vector<1x256x64xf32> to vector<256x64xf32>
    %cst_31 = arith.constant dense<0.000000e+00> : vector<32x64xf32>
    %38 = tpu.matmul %29, %37, %cst_31 {dimension_numbers = #tpu.dot_dimension_numbers<[1], [0], [0], [1], [0, 0, 1, 1], [], []>} : vector<32x256xf32>, vector<256x64xf32>, vector<32x64xf32> -> vector<32x64xf32>
    %cst_32 = arith.constant dense<0.000000e+00> : vector<32x64xf32>
    %39 = tpu.matmul %31, %37, %cst_32 {dimension_numbers = #tpu.dot_dimension_numbers<[1], [0], [0], [1], [0, 0, 1, 1], [], []>} : vector<32x256xf32>, vector<256x64xf32>, vector<32x64xf32> -> vector<32x64xf32>
    %40 = vector.shape_cast %34 : vector<32x64xf32> to vector<1x32x64xf32>
    %41 = vector.shape_cast %38 : vector<32x64xf32> to vector<1x32x64xf32>
    %42 = tpu.concatenate %40, %41 in 0 : vector<1x32x64xf32>, vector<1x32x64xf32> -> vector<2x32x64xf32>
    %43 = vector.shape_cast %35 : vector<32x64xf32> to vector<1x32x64xf32>
    %44 = vector.shape_cast %39 : vector<32x64xf32> to vector<1x32x64xf32>
    %45 = tpu.concatenate %43, %44 in 0 : vector<1x32x64xf32>, vector<1x32x64xf32> -> vector<2x32x64xf32>
    %46 = tpu.concatenate %42, %45 in 2 : vector<2x32x64xf32>, vector<2x32x64xf32> -> vector<2x32x128xf32>
    %c0_33 = arith.constant 0 : index
    %47 = memref.load %arg7[%c0_33] : memref<3xf32, #tpu.memory_space<smem>>
    %48 = vector.broadcast %47 : f32 to vector<2x32x128xf32>
    %49 = arith.addf %46, %48 : vector<2x32x128xf32>
    %50 = arith.negf %49 : vector<2x32x128xf32>
    %51 = math.exp %50 : vector<2x32x128xf32>
    %cst_34 = arith.constant 1.000000e+00 : f32
    %52 = vector.broadcast %cst_34 : f32 to vector<2x32x128xf32>
    %53 = arith.addf %52, %51 : vector<2x32x128xf32>
    %54 = arith.divf %52, %53 : vector<2x32x128xf32>
    %c0_35 = arith.constant 0 : index
    %c0_36 = arith.constant 0 : index
    %c0_37 = arith.constant 0 : index
    %55 = vector.load %arg8[%c0_35, %c0_36, %c0_37] : memref<2x32x128xf32, #tpu.memory_space<vmem>>, vector<2x32x128xf32>
    tpu.vector_store %arg8[%c0_35, %c0_36, %c0_37], %54 {strides = array<i32>} : memref<2x32x128xf32, #tpu.memory_space<vmem>>, vector<2x32x128xf32>,
    %cst_38 = arith.constant dense<0.000000e+00> : vector<2x32xf32>
    %56 = vector.multi_reduction <add>, %54, %cst_38 [2] : vector<2x32x128xf32> to vector<2x32xf32>
    %57 = vector.shape_cast %56 : vector<2x32xf32> to vector<2x32x1xf32>
    %cst_39 = arith.constant dense<0.000000e+00> : vector<2x1xf32>
    %58 = vector.multi_reduction <add>, %57, %cst_39 [1] : vector<2x32x1xf32> to vector<2x1xf32>
    %59 = vector.shape_cast %58 : vector<2x1xf32> to vector<2x1x1xf32>
    %cst_40 = arith.constant 2.44140625E-4 : f32
    %60 = vector.broadcast %cst_40 : f32 to vector<2x1x1xf32>
    %61 = arith.mulf %59, %60 : vector<2x1x1xf32>
    %c1_41 = arith.constant 1 : index
    %62 = memref.load %arg7[%c1_41] : memref<3xf32, #tpu.memory_space<smem>>
    %63 = vector.broadcast %62 : f32 to vector<2x1x1xf32>
    %64 = arith.mulf %61, %63 : vector<2x1x1xf32>
    %c2_42 = arith.constant 2 : index
    %65 = memref.load %arg7[%c2_42] : memref<3xf32, #tpu.memory_space<smem>>
    %66 = vector.broadcast %65 : f32 to vector<2x1x1xf32>
    %67 = arith.addf %64, %66 : vector<2x1x1xf32>
    %68 = arith.negf %67 : vector<2x1x1xf32>
    %69 = math.exp %68 : vector<2x1x1xf32>
    %cst_43 = arith.constant 1.000000e+00 : f32
    %70 = vector.broadcast %cst_43 : f32 to vector<2x1x1xf32>
    %71 = arith.addf %70, %69 : vector<2x1x1xf32>
    %72 = arith.divf %70, %71 : vector<2x1x1xf32>
    %c0_44 = arith.constant 0 : index
    %c0_45 = arith.constant 0 : index
    %c0_46 = arith.constant 0 : index
    %73 = vector.load %arg9[%c0_44, %c0_45, %c0_46] : memref<2x1x1xf32, #tpu.memory_space<vmem>>, vector<2x1x1xf32>
    tpu.vector_store %arg9[%c0_44, %c0_45, %c0_46], %72 {strides = array<i32>} : memref<2x1x1xf32, #tpu.memory_space<vmem>>, vector<2x1x1xf32>,
    return
  }
  func.func @transform_0(%arg0: i32) -> (i32, i32, i32) {
    %c0_i32 = arith.constant 0 : i32
    %c0_i32_0 = arith.constant 0 : i32
    %c0_i32_1 = arith.constant 0 : i32
    return %arg0, %c0_i32, %c0_i32_0 : i32, i32, i32
  }
  func.func @transform_1(%arg0: i32) -> (i32, i32, i32) {
    %c0_i32 = arith.constant 0 : i32
    %c0_i32_0 = arith.constant 0 : i32
    %c0_i32_1 = arith.constant 0 : i32
    return %arg0, %c0_i32, %c0_i32_0 : i32, i32, i32
  }
  func.func @transform_2(%arg0: i32) -> (i32, i32, i32) {
    %c0_i32 = arith.constant 0 : i32
    %c0_i32_0 = arith.constant 0 : i32
    %c0_i32_1 = arith.constant 0 : i32
    return %arg0, %c0_i32, %c0_i32_0 : i32, i32, i32
  }
  func.func @transform_3(%arg0: i32) -> (i32, i32, i32) {
    %c0_i32 = arith.constant 0 : i32
    %c0_i32_0 = arith.constant 0 : i32
    %c0_i32_1 = arith.constant 0 : i32
    return %arg0, %c0_i32, %c0_i32_0 : i32, i32, i32
  }
  func.func @transform_4(%arg0: i32) -> (i32, i32, i32) {
    %c0_i32 = arith.constant 0 : i32
    %c0_i32_0 = arith.constant 0 : i32
    %c0_i32_1 = arith.constant 0 : i32
    %c0_i32_2 = arith.constant 0 : i32
    return %c0_i32, %c0_i32_0, %c0_i32_1 : i32, i32, i32
  }
  func.func @transform_5(%arg0: i32) -> (i32, i32, i32) {
    %c0_i32 = arith.constant 0 : i32
    %c0_i32_0 = arith.constant 0 : i32
    %c0_i32_1 = arith.constant 0 : i32
    %c0_i32_2 = arith.constant 0 : i32
    return %c0_i32, %c0_i32_0, %c0_i32_1 : i32, i32, i32
  }
  func.func @transform_6(%arg0: i32) -> i32 {
    %c0_i32 = arith.constant 0 : i32
    %c0_i32_0 = arith.constant 0 : i32
    return %c0_i32 : i32
  }
  func.func @transform_7(%arg0: i32) -> (i32, i32, i32) {
    %c0_i32 = arith.constant 0 : i32
    %c0_i32_0 = arith.constant 0 : i32
    %c0_i32_1 = arith.constant 0 : i32
    return %arg0, %c0_i32, %c0_i32_0 : i32, i32, i32
  }
  func.func @transform_8(%arg0: i32) -> (i32, i32, i32) {
    %c0_i32 = arith.constant 0 : i32
    %c0_i32_0 = arith.constant 0 : i32
    %c0_i32_1 = arith.constant 0 : i32
    return %arg0, %c0_i32, %c0_i32_0 : i32, i32, i32
  }
}

</mosaic_0001>

<bundles_post_ra>
// kernel: tpu_custom_call.1
= control target key start
LH: loop header
LB: loop body
LE: loop exit
PB: predicated region body
PF: predicated region fallthrough
CT: control target
= control target key end

     0   :  { %14 = vsyncpa [#allocation4], 0  ;;  %s3245_s0 = inlined_call_operand.vmem [shape: f32[4,64,16], index: 0, kind: input, shape index: {}]   ;;  %s3246_s1 = inlined_call_operand.vmem [shape: f32[4,64,8], index: 1, kind: input, shape index: {}]   ;;  %s3247_s2 = inlined_call_operand.vmem [shape: f32[4,64,4], index: 2, kind: input, shape index: {}]   ;;  %s3248_s3 = inlined_call_operand.vmem [shape: f32[4,64,2], index: 3, kind: input, shape index: {}]   ;;  %s3249_s4 = inlined_call_operand.vmem [shape: f32[4,16,64], index: 4, kind: input, shape index: {}]   ;;  %s3250_s5 = inlined_call_operand.vmem [shape: f32[2,32,256], index: 5, kind: input, shape index: {}]   ;;  %s3251_s6 = inlined_call_operand.vmem [shape: f32[3], index: 6, kind: input, shape index: {}]   ;;  %s3252_s7 = inlined_call_operand.hbm [shape: f32[4,32,128], index: 7, kind: output, shape index: {0}]   ;;  %s3253_s8 = inlined_call_operand.vmem [shape: f32[4,1,1], index: 8, kind: output, shape index: {1}]  }
   0x1   :  { %15 = vsyncpa [#allocation3], 0 }
   0x2   :  { %17 = vsyncpa [#allocation3 + $0x1], 0  ;;  %s2773_s27 = smov 0   ;;  %s2775_s28 = smov 0  }
   0x3   :  { %s2777_s29 = smov 0   ;;  %s2779_s30 = smov 0  }
   0x4 LB: > { %s2794_s9 = sadd.s32 4294967295, %s2721_s30   ;;  %s1943_s10 = sadd.s32 4294967294, %s2721_s30   ;;  %s2721_s30 = sphi %s2779_s30, %s3260_s30   ;;  %s2717_s29 = sphi %s2777_s29, %s3259_s29   ;;  %s2713_s28 = sphi %s2775_s28, %s3258_s28   ;;  %s2709_s27 = sphi %s2773_s27, %s3257_s27  }
   0x5   : > { %s2798_s11 = sadd.s32 1, %s2721_s30   ;;  %s197_s12 = sadd.s32 1, %s2717_s29 }
   0x6   : > { %s194_s13 = ssub.s32 %s2721_s30, %s2798_s11  ;;  %p207_p0 = scmp.ne.s32.totalorder %s2717_s29, %s2713_s28 }
   0x7   : > { %p195_p1 = scmp.eq.s32.totalorder %s194_s13, 0  ;;  %p208_p2 = scmp.eq.s32.totalorder %s2794_s9, 1 }
   0x8   : > { %p213_p3 = scmp.ne.s32.totalorder %s2713_s28, %s2709_s27  ;;  %p214_p4 = scmp.eq.s32.totalorder %s1943_s10, 1 }
   0x9   : > { %s2809_s14 = scalar_select %p195_p1, %s2717_s29, %s197_s12  }
   0xa   : > { %p2811_p5 = por %p208_p2, %p207_p0  ;;  %p2815_p6 = por %p214_p4, %p213_p3 }
   0xb   : > { %p1944_p7 = scmp.ge.s32.totalorder %s2721_s30, 1  ;;  %p247_p8 = scmp.lt.s32.totalorder %s2721_s30, 3 }
   0xc   : > { %p2561_p9 = scmp.eq.s32.totalorder %s2794_s9, 0  ;;  %s266_s20 = sshll.u32 %s3251_s6, 4  ;;  %s267_s20 = int_to_ptr.vmem [resolvable:$true] %s266_s20 }
   0xd   : > { %p2822_p10 = pnand %p1944_p7, %p247_p8  ;;  %s2640_s21 = scalar_lea.vmem %s267_s20, 16 }
   0xe   : > { %p2641_p13 = scmp.ne.s32.totalorder %s267_s20, %s2640_s21  ;;  %p2648_p3 = scmp.lt.s32.totalorder %s267_s20, %s267_s20 }
   0xf   : > { %p2553_p11 = pneg %p2822_p10  ;;  %p2649_p4 = scmp.lt.s32.totalorder %s2640_s21, %s2640_s21 }
  0x11   : > { %p2554_p12 = pnand %p2561_p9, %p2553_p11  ;;  %p2650_p7 = por %p2649_p4, %p2648_p3 }
  0x13   : > { %p2642_p0 = pneg %p2554_p12 }
  0x15   : > { %p2643_p1 = pnand %p2642_p0, %p2641_p13 }
  0x17   : > { %p2644_p2 = pneg %p2643_p1 }
  0x19   : > { %p2651_p8 = pnand %p2650_p7, %p2644_p2 }
  0x1b   : > { %2654 = shalt.err (!%p2651_p8)
}
  0x1c   : > { %s2723_s22 = smov [#allocation2]   ;;  %319 = sbr.rel (%p2822_p10) target bundleno = 917 (0x395), region = 48 }
  0x1d   : > { %2556 = dma.vmem_to_smem (!%p2554_p12), %s267_s20, 16, %s2723_s22, [#allocation4]  }
  0x23   : > { %2700 = dma.done.wait (%p2561_p9), [#allocation4], 16  }
  0x24   : > { %2702 = vsyncadd (%p2561_p9), [#allocation4], 4294967280 }
  0x25   : > { %325 = sfence }
  0x26   : > { %v1979_v0 = vld [vmem:[%s3249_s4 + $0x10] sm:$0xff]  ;;  %s1950_s25 = sshll.u32 %s2794_s9, 1  ;;  %v1996_v1 = vld [vmem:[%s3249_s4 + $0x20] sm:$0xff]  ;;  %vm902_vm0 = vcmask 1043456   ;;  %v428_v3 = vld [vmem:[%s3249_s4 + $0x8] sm:$0xff]  ;;  %vm1118_vm1 = vcmask 1041408  }
  0x27   : > { %v427_v2 = vld [vmem:[%s3249_s4] sm:$0xff]  ;;  %2337 = vmatprep.subr.mxu1 %v1979_v0  ;;  %p378_p10 = scmp.lt.s32.totalorder %s1950_s25, 3  ;;  %v2014_v5 = vld [vmem:[%s3249_s4 + $0x30] sm:$0xff]  ;;  %vm641_vm2 = vcmask 64512   ;;  %vm429_vm3 = vcmask 130048   ;;  %vm853_vm4 = vcmask 31744  }
  0x28   : > { %2338 = vmatpush3.msra.mxu1 %v1979_v0  ;;  %v2415_v4 = vpack.c.bf16 %v428_v3, %v427_v2  ;;  %vm1069_vm5 = vcmask 15360   ;;  %s1665_s19 = sld [smem:[#allocation2]]  ;;  %vm1656_vm6 = vcmask 523264   ;;  %s368_s20 = sand.u32 1, %s2713_s28  }
  0x29   : > { %s3262_s25 = smov (!%p378_p10, %s1950_s25), 3  ;;  %2363 = vmatprep.subr.msk.mxu1 %vm902_vm0, %v1996_v1  ;;  %s2063_s23 = sshll.u32 %s2794_s9, 10 }
  0x2a   : > { %2416 = vmatprep.subr.bf16.mxu0 %v2415_v4  ;;  %s2859_s21 = sshll.u32 %s3262_s25, 6  ;;  %s3194_s13 = scalar_lea.sflag [#allocation3], %s368_s20 }
  0x2b   : > { %2418 = vmatpush3.bf16.msra.mxu0 %v2415_v4  ;;  %s2865_s24 = scalar_lea.vmem %s3246_s1, %s2859_s21  ;;  %s2871_s12 = scalar_lea.vmem %s3245_s0, %s2859_s21 }
  0x2c   : > { %2389 = vmatprep.subr.msk.mxu0 %vm1118_vm1, %v2014_v5  ;;  %v623_v6 = vld [vmem:[%s2865_s24] sm:$0xff]  ;;  %v624_v7 = vld [vmem:[%s2865_s24 + $0x8] sm:$0xff]  ;;  %v625_v8 = vld [vmem:[%s2865_s24 + $0x10] sm:$0xff]  ;;  %s2932_s18 = scalar_lea.vmem %s3247_s2, %s2859_s21  ;;  %s2946_s22 = scalar_lea.vmem %s3248_s3, %s2859_s21 }
  0x2d   : > { %2339 = vmatprep.mubr.msk.f32.mxu1 %vm641_vm2, %v623_v6  ;;  %v411_v9 = vld [vmem:[%s2871_s12] sm:$0xff]  ;;  %v626_v10 = vld [vmem:[%s2865_s24 + $0x18] sm:$0xff]  ;;  %v412_v11 = vld [vmem:[%s2871_s12 + $0x8] sm:$0xff]  ;;  %s2725_s9 = smov [#allocation5]  }
  0x2e   : > { %2340 = vmatmul.mubr.msk.f32.vlgmr.msra.gmra.mrb[0].mxu1 %vm641_vm2, %v624_v7  ;;  %v627_v12 = vld [vmem:[%s2865_s24 + $0x20] sm:$0xff]  ;;  %2313 = vmatprep.mubr.msk.f32.mxu0 %vm429_vm3, %v411_v9  ;;  %v413_v13 = vld [vmem:[%s2871_s12 + $0x10] sm:$0xff]  ;;  %v414_v14 = vld [vmem:[%s2871_s12 + $0x18] sm:$0xff] }
  0x2f   : > { %2364 = vmatpush3.msk.msra.mxu1 %vm902_vm0, %v1996_v1  ;;  %2342 = vmatprep.mubr.msk.f32.mxu1 %vm641_vm2, %v625_v8  ;;  %v628_v15 = vld [vmem:[%s2865_s24 + $0x28] sm:$0xff]  ;;  %v415_v16 = vld [vmem:[%s2871_s12 + $0x20] sm:$0xff]  ;;  %v629_v17 = vld [vmem:[%s2865_s24 + $0x30] sm:$0xff] }
  0x30   : > { %2314 = vmatmul.mubr.msk.f32.vlgmr.msra.gmra.mrb[0].mxu0 %vm429_vm3, %v412_v11  ;;  %v416_v18 = vld [vmem:[%s2871_s12 + $0x28] sm:$0xff]  ;;  %v630_v19 = vld [vmem:[%s2865_s24 + $0x38] sm:$0xff]  ;;  %v417_v20 = vld [vmem:[%s2871_s12 + $0x30] sm:$0xff] }
  0x31   : > { %2390 = vmatpush3.msk.msra.mxu0 %vm1118_vm1, %v2014_v5  ;;  %2316 = vmatprep.mubr.msk.f32.mxu0 %vm429_vm3, %v413_v13  ;;  %v631_v21 = vld [vmem:[%s2865_s24 + $0x40] sm:$0xff]  ;;  %v418_v22 = vld [vmem:[%s2871_s12 + $0x38] sm:$0xff]  ;;  %v632_v23 = vld [vmem:[%s2865_s24 + $0x48] sm:$0xff] }
  0x32   : > { %2343 = vmatmul.mubr.msk.f32.gmra.mrb[2].mxu1 %vm641_vm2, %v626_v10  ;;  %v419_v24 = vld [vmem:[%s2871_s12 + $0x40] sm:$0xff]  ;;  %v633_v25 = vld [vmem:[%s2865_s24 + $0x50] sm:$0xff]  ;;  %v420_v26 = vld [vmem:[%s2871_s12 + $0x48] sm:$0xff] }
  0x33   : > { %2345 = vmatprep.mubr.msk.f32.mxu1 %vm641_vm2, %v627_v12  ;;  %v634_v27 = vld [vmem:[%s2865_s24 + $0x58] sm:$0xff]  ;;  %v421_v28 = vld [vmem:[%s2871_s12 + $0x50] sm:$0xff]  ;;  %v635_v29 = vld [vmem:[%s2865_s24 + $0x60] sm:$0xff] }
  0x34   : > { %2317 = vmatmul.mubr.msk.f32.gmra.mrb[2].mxu0 %vm429_vm3, %v414_v14  ;;  %v422_v30 = vld [vmem:[%s2871_s12 + $0x58] sm:$0xff]  ;;  %v636_v31 = vld [vmem:[%s2865_s24 + $0x68] sm:$0xff]  ;;  %v423_v32 = vld [vmem:[%s2871_s12 + $0x60] sm:$0xff] }
  0x35   : > { %2319 = vmatprep.mubr.msk.f32.mxu0 %vm429_vm3, %v415_v16  ;;  %v637_v33 = vld [vmem:[%s2865_s24 + $0x70] sm:$0xff]  ;;  %v424_v34 = vld [vmem:[%s2871_s12 + $0x68] sm:$0xff]  ;;  %v638_v35 = vld [vmem:[%s2865_s24 + $0x78] sm:$0xff] }
  0x36   : > { %2346 = vmatmul.mubr.msk.f32.gmra.mrb[4].mxu1 %vm641_vm2, %v628_v15  ;;  %v425_v36 = vld [vmem:[%s2871_s12 + $0x70] sm:$0xff]  ;;  %v835_v37 = vld [vmem:[%s2932_s18] sm:$0xff]  ;;  %v426_v38 = vld [vmem:[%s2871_s12 + $0x78] sm:$0xff]  ;;  %s3188_s12 = scalar_lea.hbm %s3252_s7, %s2063_s23 }
  0x37   : > { %2348 = vmatprep.mubr.msk.f32.mxu1 %vm641_vm2, %v629_v17  ;;  %v836_v39 = vld [vmem:[%s2932_s18 + $0x8] sm:$0xff]  ;;  %v1051_v40 = vld [vmem:[%s2946_s22] sm:$0xff]  ;;  %v837_v41 = vld [vmem:[%s2932_s18 + $0x10] sm:$0xff] }
  0x38   : > { %2320 = vmatmul.mubr.msk.f32.gmra.mrb[4].mxu0 %vm429_vm3, %v416_v18  ;;  %v1052_v42 = vld [vmem:[%s2946_s22 + $0x8] sm:$0xff]  ;;  %v838_v43 = vld [vmem:[%s2932_s18 + $0x18] sm:$0xff]  ;;  %v1053_v44 = vld [vmem:[%s2946_s22 + $0x10] sm:$0xff] }
  0x39   : > { %2322 = vmatprep.mubr.msk.f32.mxu0 %vm429_vm3, %v417_v20  ;;  %v839_v45 = vld [vmem:[%s2932_s18 + $0x20] sm:$0xff]  ;;  %v1054_v46 = vld [vmem:[%s2946_s22 + $0x18] sm:$0xff]  ;;  %v840_v47 = vld [vmem:[%s2932_s18 + $0x28] sm:$0xff] }
  0x3a   : > { %2349 = vmatmul.mubr.msk.f32.gmra.mrb[6].mxu1 %vm641_vm2, %v630_v19  ;;  %v1055_v48 = vld [vmem:[%s2946_s22 + $0x20] sm:$0xff]  ;;  %v841_v49 = vld [vmem:[%s2932_s18 + $0x30] sm:$0xff]  ;;  %v1056_v50 = vld [vmem:[%s2946_s22 + $0x28] sm:$0xff] }
  0x3b   : > { %2351 = vmatprep.mubr.msk.f32.mxu1 %vm641_vm2, %v631_v21  ;;  %v842_v51 = vld [vmem:[%s2932_s18 + $0x38] sm:$0xff]  ;;  %v1057_v52 = vld [vmem:[%s2946_s22 + $0x30] sm:$0xff]  ;;  %v843_v53 = vld [vmem:[%s2932_s18 + $0x40] sm:$0xff] }
  0x3c   : > { %2323 = vmatmul.mubr.msk.f32.gmra.mrb[6].mxu0 %vm429_vm3, %v418_v22  ;;  %v1058_v54 = vld [vmem:[%s2946_s22 + $0x38] sm:$0xff]  ;;  %v844_v55 = vld [vmem:[%s2932_s18 + $0x48] sm:$0xff]  ;;  %v1059_v56 = vld [vmem:[%s2946_s22 + $0x40] sm:$0xff] }
  0x3d   : > { %2325 = vmatprep.mubr.msk.f32.mxu0 %vm429_vm3, %v419_v24  ;;  %v845_v57 = vld [vmem:[%s2932_s18 + $0x50] sm:$0xff]  ;;  %v1060_v58 = vld [vmem:[%s2946_s22 + $0x48] sm:$0xff]  ;;  %v846_v59 = vld [vmem:[%s2932_s18 + $0x58] sm:$0xff] }
  0x3e   : > { %2352 = vmatmul.mubr.msk.f32.gmra.mrb[8].mxu1 %vm641_vm2, %v632_v23  ;;  %v1061_v60 = vld [vmem:[%s2946_s22 + $0x50] sm:$0xff]  ;;  %v847_v61 = vld [vmem:[%s2932_s18 + $0x60] sm:$0xff]  ;;  %v1062_v62 = vld [vmem:[%s2946_s22 + $0x58] sm:$0xff] }
  0x3f   : > { %2354 = vmatprep.mubr.msk.f32.mxu1 %vm641_vm2, %v633_v25  ;;  %v848_v63 = vld [vmem:[%s2932_s18 + $0x68] sm:$0xff]  ;;  %v1063_v0 = vld [vmem:[%s2946_s22 + $0x60] sm:$0xff]  ;;  %v849_v1 = vld [vmem:[%s2932_s18 + $0x70] sm:$0xff] }
  0x40   : > { %2326 = vmatmul.mubr.msk.f32.gmra.mrb[8].mxu0 %vm429_vm3, %v420_v26  ;;  %v1064_v2 = vld [vmem:[%s2946_s22 + $0x68] sm:$0xff]  ;;  %v850_v3 = vld [vmem:[%s2932_s18 + $0x78] sm:$0xff]  ;;  %v1065_v4 = vld [vmem:[%s2946_s22 + $0x70] sm:$0xff]  ;;  %s2724_s18 = smov 64  }
  0x41   : > { %2328 = vmatprep.mubr.msk.f32.mxu0 %vm429_vm3, %v421_v28  ;;  %v1066_v5 = vld [vmem:[%s2946_s22 + $0x78] sm:$0xff]  ;;  %v3019_v6 = vld [vmem:[%s3250_s5 + $0x48] sm:$0xff]  ;;  %s1949_s22 = sshll.u32 %s368_s20, 6 }
  0x42   : > { %2355 = vmatmul.mubr.msk.f32.gmra.mrb[10].mxu1 %vm641_vm2, %v634_v27  ;;  %v3025_v7 = vld [vmem:[%s3250_s5 + $0x8] sm:$0xff]  ;;  %s3161_s21 = scalar_lea.vmem [#allocation5], %s1949_s22 }
  0x43   : > { %2357 = vmatprep.mubr.msk.f32.mxu1 %vm641_vm2, %v635_v29  ;;  %s1809_s24 = sshll.u32 %s3161_s21, 4  ;;  %s3190_s24 = int_to_ptr.vmem [resolvable:$true] %s1809_s24 }
  0x44   : > { %2329 = vmatmul.mubr.msk.f32.gmra.mrb[10].mxu0 %vm429_vm3, %v422_v30  ;;  %s2655_s17 = scalar_lea.vmem %s3190_s24, 1024 }
  0x45   : > { %2331 = vmatprep.mubr.msk.f32.mxu0 %vm429_vm3, %v423_v32  ;;  %p2656_p9 = scmp.ne.s32.totalorder %s3190_s24, %s2655_s17 }
  0x46   : > { %2358 = vmatmul.mubr.msk.f32.gmra.mrb[12].mxu1 %vm641_vm2, %v636_v31 }
  0x47   : > { %2360 = vmatprep.mubr.msk.f32.mxu1 %vm641_vm2, %v637_v33  ;;  %p2657_p11 = pnand %p2656_p9, %p2811_p5 }
  0x48   : > { %2332 = vmatmul.mubr.msk.f32.gmra.mrb[12].mxu0 %vm429_vm3, %v424_v34 }
  0x49   : > { %2334 = vmatprep.mubr.msk.f32.mxu0 %vm429_vm3, %v425_v36  ;;  %p2658_p12 = pneg %p2657_p11 }
  0x4a   : > { %2361 = vmatmul.mubr.msk.f32.gmra.mrb[14].mxu1 %vm641_vm2, %v638_v35 }
  0x4b   : > { %2365 = vmatprep.mubr.msk.f32.mxu1 %vm853_vm4, %v835_v37 }
  0x4c   : > { %2335 = vmatmul.mubr.msk.f32.gmra.mrb[14].mxu0 %vm429_vm3, %v426_v38 }
  0x4d   : > { %2391 = vmatprep.mubr.msk.f32.mxu0 %vm1069_vm5, %v1051_v40 }
  0x4e   : > { %2366 = vmatmul.mubr.msk.f32.vlgmr.msra.gmra.mrb[16].mxu1 %vm853_vm4, %v836_v39 }
  0x4f   : > { %2368 = vmatprep.mubr.msk.f32.mxu1 %vm853_vm4, %v837_v41 }
  0x50   : > { %2392 = vmatmul.mubr.msk.f32.vlgmr.msra.gmra.mrb[16].mxu0 %vm1069_vm5, %v1052_v42 }
  0x51   : > { %2394 = vmatprep.mubr.msk.f32.mxu0 %vm1069_vm5, %v1053_v44 }
  0x52   : > { %2369 = vmatmul.mubr.msk.f32.gmra.mrb[18].mxu1 %vm853_vm4, %v838_v43 }
  0x53   : > { %2371 = vmatprep.mubr.msk.f32.mxu1 %vm853_vm4, %v839_v45 }
  0x54   : > { %2395 = vmatmul.mubr.msk.f32.gmra.mrb[18].mxu0 %vm1069_vm5, %v1054_v46 }
  0x55   : > { %2397 = vmatprep.mubr.msk.f32.mxu0 %vm1069_vm5, %v1055_v48 }
  0x56   : > { %2372 = vmatmul.mubr.msk.f32.gmra.mrb[20].mxu1 %vm853_vm4, %v840_v47 }
  0x57   : > { %2374 = vmatprep.mubr.msk.f32.mxu1 %vm853_vm4, %v841_v49 }
  0x58   : > { %2398 = vmatmul.mubr.msk.f32.gmra.mrb[20].mxu0 %vm1069_vm5, %v1056_v50 }
  0x59   : > { %2400 = vmatprep.mubr.msk.f32.mxu0 %vm1069_vm5, %v1057_v52 }
  0x5a   : > { %2375 = vmatmul.mubr.msk.f32.gmra.mrb[22].mxu1 %vm853_vm4, %v842_v51 }
  0x5b   : > { %2377 = vmatprep.mubr.msk.f32.mxu1 %vm853_vm4, %v843_v53 }
  0x5c   : > { %2401 = vmatmul.mubr.msk.f32.gmra.mrb[22].mxu0 %vm1069_vm5, %v1058_v54 }
  0x5d   : > { %2403 = vmatprep.mubr.msk.f32.mxu0 %vm1069_vm5, %v1059_v56 }
  0x5e   : > { %2378 = vmatmul.mubr.msk.f32.gmra.mrb[24].mxu1 %vm853_vm4, %v844_v55 }
  0x5f   : > { %2380 = vmatprep.mubr.msk.f32.mxu1 %vm853_vm4, %v845_v57 }
  0x60   : > { %2404 = vmatmul.mubr.msk.f32.gmra.mrb[24].mxu0 %vm1069_vm5, %v1060_v58 }
  0x61   : > { %2406 = vmatprep.mubr.msk.f32.mxu0 %vm1069_vm5, %v1061_v60 }
  0x62   : > { %2381 = vmatmul.mubr.msk.f32.gmra.mrb[26].mxu1 %vm853_vm4, %v846_v59 }
  0x63   : > { %2383 = vmatprep.mubr.msk.f32.mxu1 %vm853_vm4, %v847_v61 }
  0x64   : > { %2407 = vmatmul.mubr.msk.f32.gmra.mrb[26].mxu0 %vm1069_vm5, %v1062_v62 }
  0x65   : > { %2409 = vmatprep.mubr.msk.f32.mxu0 %vm1069_vm5, %v1063_v0 }
  0x66   : > { %2384 = vmatmul.mubr.msk.f32.gmra.mrb[28].mxu1 %vm853_vm4, %v848_v63 }
  0x67   : > { %2386 = vmatprep.mubr.msk.f32.mxu1 %vm853_vm4, %v849_v1 }
  0x68   : > { %2410 = vmatmul.mubr.msk.f32.gmra.mrb[28].mxu0 %vm1069_vm5, %v1064_v2 }
  0x69   : > { %2412 = vmatprep.mubr.msk.f32.mxu0 %vm1069_vm5, %v1065_v4 }
  0x6a   : > { %2387 = vmatmul.mubr.msk.f32.gmra.mrb[30].mxu1 %vm853_vm4, %v850_v3 }
  0x6b   : > { %1348 = vmatprep.mubr.f32.mxu1 %v3025_v7 }
  0x6c   : > { %2413 = vmatmul.mubr.msk.f32.gmra.mrb[30].mxu0 %vm1069_vm5, %v1066_v5 }
  0x6d   : > { %1433 = vmatprep.mubr.f32.mxu0 %v3019_v6 }
 0x101   : > { %v2341_v8 = vpop.f32.mrb[0].mxu1 }
 0x102   : > { %v756_v9 = vpop.f32.mrb[1].mxu1 }
 0x103   : > { %v3028_v10 = vpack.c.bf16 %v2341_v8, %v756_v9  ;;  %v2315_v11 = vpop.f32.mrb[0].mxu0 }
 0x104   : > { %v544_v13 = vpop.f32.mrb[1].mxu0 }
 0x105   : > { %v2344_v12 = vpop.f32.mrb[2].mxu1  ;;  %v2421_v15 = vpack.c.bf16 %v2315_v11, %v544_v13 }
 0x106   : > { %v766_v14 = vpop.f32.mrb[3].mxu1 }
 0x107   : > { %v3030_v16 = vpack.c.bf16 %v2344_v12, %v766_v14  ;;  %v2318_v17 = vpop.f32.mrb[2].mxu0 }
 0x108   : > { %v554_v19 = vpop.f32.mrb[3].mxu0 }
 0x109   : > { %v2347_v18 = vpop.f32.mrb[4].mxu1  ;;  %v2425_v21 = vpack.c.bf16 %v2318_v17, %v554_v19 }
 0x10a   : > { %v776_v20 = vpop.f32.mrb[5].mxu1 }
 0x10b   : > { %v3032_v22 = vpack.c.bf16 %v2347_v18, %v776_v20  ;;  %v2321_v23 = vpop.f32.mrb[4].mxu0 }
 0x10c   : > { %v564_v25 = vpop.f32.mrb[5].mxu0 }
 0x10d   : > { %v2350_v24 = vpop.f32.mrb[6].mxu1  ;;  %v2429_v27 = vpack.c.bf16 %v2321_v23, %v564_v25 }
 0x10e   : > { %v786_v26 = vpop.f32.mrb[7].mxu1 }
 0x10f   : > { %v3034_v28 = vpack.c.bf16 %v2350_v24, %v786_v26  ;;  %v2324_v29 = vpop.f32.mrb[6].mxu0 }
 0x110   : > { %v574_v31 = vpop.f32.mrb[7].mxu0 }
 0x111   : > { %v2353_v30 = vpop.f32.mrb[8].mxu1  ;;  %v2433_v33 = vpack.c.bf16 %v2324_v29, %v574_v31 }
 0x112   : > { %v796_v32 = vpop.f32.mrb[9].mxu1 }
 0x113   : > { %v3036_v34 = vpack.c.bf16 %v2353_v30, %v796_v32  ;;  %v2327_v35 = vpop.f32.mrb[8].mxu0 }
 0x114   : > { %v584_v37 = vpop.f32.mrb[9].mxu0 }
 0x115   : > { %v2356_v36 = vpop.f32.mrb[10].mxu1  ;;  %v3038_v39 = vpack.c.bf16 %v2327_v35, %v584_v37 }
 0x116   : > { %v806_v38 = vpop.f32.mrb[11].mxu1 }
 0x117   : > { %v3040_v40 = vpack.c.bf16 %v2356_v36, %v806_v38  ;;  %v2330_v41 = vpop.f32.mrb[10].mxu0 }
 0x118   : > { %v594_v43 = vpop.f32.mrb[11].mxu0 }
 0x119   : > { %v2359_v42 = vpop.f32.mrb[12].mxu1  ;;  %v3042_v45 = vpack.c.bf16 %v2330_v41, %v594_v43 }
 0x11a   : > { %v816_v44 = vpop.f32.mrb[13].mxu1 }
 0x11b   : > { %v3044_v46 = vpack.c.bf16 %v2359_v42, %v816_v44  ;;  %v2333_v47 = vpop.f32.mrb[12].mxu0 }
 0x11c   : > { %v604_v49 = vpop.f32.mrb[13].mxu0 }
 0x11d   : > { %v2362_v48 = vpop.f32.mrb[14].mxu1  ;;  %v3046_v51 = vpack.c.bf16 %v2333_v47, %v604_v49 }
 0x11e   : > { %v826_v50 = vpop.f32.mrb[15].mxu1 }
 0x11f   : > { %v3048_v52 = vpack.c.bf16 %v2362_v48, %v826_v50  ;;  %v2336_v53 = vpop.f32.mrb[14].mxu0  ;;  %v2032_v48 = vld [vmem:[%s3250_s5 + $0x40] sm:$0xff]  ;;  %v2035_v50 = vld [vmem:[%s3250_s5 + $0x58] sm:$0xff] }
 0x120   : > { %v614_v55 = vpop.f32.mrb[15].mxu0 }
 0x121   : > { %v2367_v54 = vpop.f32.mrb[16].mxu1  ;;  %v3050_v57 = vpack.c.bf16 %v2336_v53, %v614_v55  ;;  %v2034_v53 = vld [vmem:[%s3250_s5 + $0x50] sm:$0xff]  ;;  %v2037_v55 = vld [vmem:[%s3250_s5 + $0x68] sm:$0xff] }
 0x122   : > { %v972_v56 = vpop.f32.mrb[17].mxu1 }
 0x123   : > { %v2419_v58 = vpack.c.bf16 %v2367_v54, %v972_v56  ;;  %v2393_v59 = vpop.f32.mrb[16].mxu0  ;;  %v1269_v54 = vld [vmem:[%s3250_s5 + $0x10] sm:$0xff]  ;;  %v2036_v56 = vld [vmem:[%s3250_s5 + $0x60] sm:$0xff] }
 0x124   : > { %v1188_v61 = vpop.f32.mrb[17].mxu0 }
 0x125   : > { %v2370_v60 = vpop.f32.mrb[18].mxu1  ;;  %2420 = vmatprep.subr.bf16.mxu1 %v2419_v58  ;;  %2452 = vmatprep.subr.bf16.mxu0 %v2419_v58  ;;  %v2435_v63 = vpack.c.bf16 %v2393_v59, %v1188_v61  ;;  %v1271_v58 = vld [vmem:[%s3250_s5 + $0x20] sm:$0xff]  ;;  %v2039_v59 = vld [vmem:[%s3250_s5 + $0x78] sm:$0xff]  ;;  %v1273_v61 = vld [vmem:[%s3250_s5 + $0x30] sm:$0xff] }
 0x126   : > { %v982_v62 = vpop.f32.mrb[19].mxu1  ;;  %2422 = vmatpush3.bf16.msra.mxu1 %v2421_v15  ;;  %2454 = vmatpush3.bf16.msra.mxu0 %v2421_v15 }
 0x127   : > { %v2423_v0 = vpack.c.bf16 %v2370_v60, %v982_v62  ;;  %v2396_v1 = vpop.f32.mrb[18].mxu0  ;;  %v2038_v60 = vld [vmem:[%s3250_s5 + $0x70] sm:$0xff] }
 0x128   : > { %v1198_v3 = vpop.f32.mrb[19].mxu0 }
 0x129   : > { %v2373_v2 = vpop.f32.mrb[20].mxu1  ;;  %2424 = vmatprep.subr.bf16.mxu1 %v2423_v0  ;;  %2456 = vmatprep.subr.bf16.mxu0 %v2423_v0  ;;  %v2439_v5 = vpack.c.bf16 %v2396_v1, %v1198_v3 }
 0x12a   : > { %v992_v4 = vpop.f32.mrb[21].mxu1  ;;  %2426 = vmatpush3.bf16.msra.mxu1 %v2425_v21  ;;  %2458 = vmatpush3.bf16.msra.mxu0 %v2425_v21 }
 0x12b   : > { %v2427_v8 = vpack.c.bf16 %v2373_v2, %v992_v4  ;;  %v2399_v9 = vpop.f32.mrb[20].mxu0 }
 0x12c   : > { %v1208_v12 = vpop.f32.mrb[21].mxu0 }
 0x12d   : > { %v2376_v11 = vpop.f32.mrb[22].mxu1  ;;  %2428 = vmatprep.subr.bf16.mxu1 %v2427_v8  ;;  %2460 = vmatprep.subr.bf16.mxu0 %v2427_v8  ;;  %v2443_v14 = vpack.c.bf16 %v2399_v9, %v1208_v12 }
 0x12e   : > { %v1002_v13 = vpop.f32.mrb[23].mxu1  ;;  %2430 = vmatpush3.bf16.msra.mxu1 %v2429_v27  ;;  %2462 = vmatpush3.bf16.msra.mxu0 %v2429_v27 }
 0x12f   : > { %v2431_v15 = vpack.c.bf16 %v2376_v11, %v1002_v13  ;;  %v2402_v17 = vpop.f32.mrb[22].mxu0 }
 0x130   : > { %v1218_v18 = vpop.f32.mrb[23].mxu0 }
 0x131   : > { %2432 = vmatprep.subr.bf16.mxu1 %v2431_v15  ;;  %2464 = vmatprep.subr.bf16.mxu0 %v2431_v15  ;;  %v2379_v19 = vpop.f32.mrb[24].mxu1  ;;  %v2447_v20 = vpack.c.bf16 %v2402_v17, %v1218_v18 }
 0x132   : > { %2434 = vmatpush3.bf16.msra.mxu1 %v2433_v33  ;;  %2466 = vmatpush3.bf16.msra.mxu0 %v2433_v33  ;;  %v1012_v21 = vpop.f32.mrb[25].mxu1 }
 0x133   : > { %2436 = vmatprep.subr.bf16.mxu1 %v2435_v63  ;;  %2468 = vmatprep.subr.bf16.mxu0 %v2435_v63  ;;  %v2483_v23 = vpack.c.bf16 %v2379_v19, %v1012_v21  ;;  %v2405_v24 = vpop.f32.mrb[24].mxu0 }
 0x134   : > { %v1228_v26 = vpop.f32.mrb[25].mxu0 }
 0x135   : > { %v2382_v25 = vpop.f32.mrb[26].mxu1  ;;  %v3054_v29 = vpack.c.bf16 %v2405_v24, %v1228_v26 }
 0x136   : > { %2438 = vmatpush3.bf16.msra.mxu1 %v3028_v10  ;;  %2470 = vmatpush3.bf16.msra.mxu0 %v3028_v10  ;;  %v1022_v27 = vpop.f32.mrb[27].mxu1 }
 0x137   : > { %2440 = vmatprep.subr.bf16.mxu1 %v2439_v5  ;;  %2472 = vmatprep.subr.bf16.mxu0 %v2439_v5  ;;  %v2487_v30 = vpack.c.bf16 %v2382_v25, %v1022_v27  ;;  %v2408_v31 = vpop.f32.mrb[26].mxu0 }
 0x138   : > { %v1238_v33 = vpop.f32.mrb[27].mxu0 }
 0x139   : > { %v2385_v32 = vpop.f32.mrb[28].mxu1  ;;  %v3058_v36 = vpack.c.bf16 %v2408_v31, %v1238_v33 }
 0x13a   : > { %2442 = vmatpush3.bf16.msra.mxu1 %v3030_v16  ;;  %2474 = vmatpush3.bf16.msra.mxu0 %v3030_v16  ;;  %v1032_v35 = vpop.f32.mrb[29].mxu1 }
 0x13b   : > { %2444 = vmatprep.subr.bf16.mxu1 %v2443_v14  ;;  %2476 = vmatprep.subr.bf16.mxu0 %v2443_v14  ;;  %v2491_v37 = vpack.c.bf16 %v2385_v32, %v1032_v35  ;;  %v2411_v10 = vpop.f32.mrb[28].mxu0 }
 0x13c   : > { %v1248_v41 = vpop.f32.mrb[29].mxu0 }
 0x13d   : > { %v2388_v38 = vpop.f32.mrb[30].mxu1  ;;  %v3062_v43 = vpack.c.bf16 %v2411_v10, %v1248_v41 }
 0x13e   : > { %2446 = vmatpush3.bf16.msra.mxu1 %v3032_v22  ;;  %2478 = vmatpush3.bf16.msra.mxu0 %v3032_v22  ;;  %v1042_v42 = vpop.f32.mrb[31].mxu1  ;;  %v1267_v22 = vld [vmem:[%s3250_s5] sm:$0xff] }
 0x13f   : > { %2448 = vmatprep.subr.bf16.mxu1 %v2447_v20  ;;  %2480 = vmatprep.subr.bf16.mxu0 %v2447_v20  ;;  %v2495_v44 = vpack.c.bf16 %v2388_v38, %v1042_v42  ;;  %v2414_v16 = vpop.f32.mrb[30].mxu0 }
 0x140   : > { %v1258_v47 = vpop.f32.mrb[31].mxu0 }
 0x141   : > { %v2511_v49 = vpack.c.bf16 %v2414_v16, %v1258_v47  ;;  %v3148_v47 = vstv %s1665_s19 }
 0x142   : > { %2450 = vmatpush3.bf16.msra.mxu1 %v3034_v28  ;;  %2482 = vmatpush3.bf16.msra.mxu0 %v3034_v28  ;;  %v1270_v28 = vld [vmem:[%s3250_s5 + $0x18] sm:$0xff] }
 0x143   : > { %2484 = vmatprep.subr.bf16.mxu1 %v2483_v23  ;;  %2516 = vmatprep.subr.bf16.mxu0 %v2483_v23 }
 0x145   : > { %1434 = vmatmul.mubr.f32.vlgmr.msra.gmra.mrb[32].mxu0 %v2032_v48  ;;  %1349 = vmatmul.mubr.f32.vlgmr.msra.gmra.mrb[32].mxu1 %v1267_v22 }
 0x146   : > { %2486 = vmatpush3.bf16.msra.mxu1 %v3038_v39  ;;  %2518 = vmatpush3.bf16.msra.mxu0 %v3038_v39  ;;  %v1272_v39 = vld [vmem:[%s3250_s5 + $0x28] sm:$0xff] }
 0x147   : > { %1438 = vmatprep.mubr.f32.mxu0 %v2035_v50  ;;  %2488 = vmatprep.subr.bf16.mxu1 %v2487_v30 }
 0x148   : > { %2520 = vmatprep.subr.bf16.mxu0 %v2487_v30  ;;  %1353 = vmatprep.mubr.f32.mxu1 %v1270_v28 }
 0x149   : > { %1439 = vmatmul.mubr.f32.gmra.mrb[34].mxu0 %v2034_v53  ;;  %1354 = vmatmul.mubr.f32.gmra.mrb[34].mxu1 %v1269_v54 }
 0x14a   : > { %2490 = vmatpush3.bf16.msra.mxu1 %v3042_v45  ;;  %2522 = vmatpush3.bf16.msra.mxu0 %v3042_v45  ;;  %v1274_v45 = vld [vmem:[%s3250_s5 + $0x38] sm:$0xff] }
 0x14b   : > { %1443 = vmatprep.mubr.f32.mxu0 %v2037_v55  ;;  %2492 = vmatprep.subr.bf16.mxu1 %v2491_v37 }
 0x14c   : > { %2524 = vmatprep.subr.bf16.mxu0 %v2491_v37  ;;  %1358 = vmatprep.mubr.f32.mxu1 %v1272_v39 }
 0x14d   : > { %1444 = vmatmul.mubr.f32.gmra.mrb[36].mxu0 %v2036_v56  ;;  %1359 = vmatmul.mubr.f32.gmra.mrb[36].mxu1 %v1271_v58 }
 0x14e   : > { %2494 = vmatpush3.bf16.msra.mxu1 %v3046_v51  ;;  %2526 = vmatpush3.bf16.msra.mxu0 %v3046_v51 }
 0x14f   : > { %1448 = vmatprep.mubr.f32.mxu0 %v2039_v59  ;;  %2496 = vmatprep.subr.bf16.mxu1 %v2495_v44 }
 0x150   : > { %2528 = vmatprep.subr.bf16.mxu0 %v2495_v44  ;;  %1363 = vmatprep.mubr.f32.mxu1 %v1274_v45 }
 0x151   : > { %1449 = vmatmul.mubr.f32.gmra.mrb[38].mxu0 %v2038_v60  ;;  %1364 = vmatmul.mubr.f32.gmra.mrb[38].mxu1 %v1273_v61 }
 0x152   : > { %2498 = vmatpush3.bf16.msra.mxu1 %v3050_v57  ;;  %2530 = vmatpush3.bf16.msra.mxu0 %v3050_v57 }
 0x153   : > { %2500 = vmatprep.subr.bf16.mxu1 %v3054_v29  ;;  %2532 = vmatprep.subr.bf16.mxu0 %v3054_v29 }
 0x154   : > { %1603 = vmatprep.mubr.f32.mxu0 %v3019_v6  ;;  %1518 = vmatprep.mubr.f32.mxu1 %v3025_v7 }
 0x156   : > { %2502 = vmatpush3.bf16.msra.mxu1 %v3036_v34  ;;  %2534 = vmatpush3.bf16.msra.mxu0 %v3036_v34 }
 0x157   : > { %2504 = vmatprep.subr.bf16.mxu1 %v3058_v36  ;;  %2536 = vmatprep.subr.bf16.mxu0 %v3058_v36 }
 0x15a   : > { %2506 = vmatpush3.bf16.msra.mxu1 %v3040_v40  ;;  %2538 = vmatpush3.bf16.msra.mxu0 %v3040_v40 }
 0x15b   : > { %2508 = vmatprep.subr.bf16.mxu1 %v3062_v43  ;;  %2540 = vmatprep.subr.bf16.mxu0 %v3062_v43 }
 0x15e   : > { %2510 = vmatpush3.bf16.msra.mxu1 %v3044_v46  ;;  %2542 = vmatpush3.bf16.msra.mxu0 %v3044_v46 }
 0x15f   : > { %2512 = vmatprep.subr.bf16.mxu1 %v2511_v49  ;;  %2544 = vmatprep.subr.bf16.mxu0 %v2511_v49 }
 0x162   : > { %2514 = vmatpush3.bf16.msra.mxu1 %v3048_v52  ;;  %2546 = vmatpush3.bf16.msra.mxu0 %v3048_v52 }
 0x165   : > { %1604 = vmatmul.mubr.f32.vlgmr.msra.gmra.mrb[40].mxu0 %v2032_v48  ;;  %1519 = vmatmul.mubr.f32.vlgmr.msra.gmra.mrb[40].mxu1 %v1267_v22 }
 0x166   : > { %1608 = vmatprep.mubr.f32.mxu0 %v2035_v50  ;;  %1523 = vmatprep.mubr.f32.mxu1 %v1270_v28 }
 0x169   : > { %1609 = vmatmul.mubr.f32.gmra.mrb[42].mxu0 %v2034_v53  ;;  %1524 = vmatmul.mubr.f32.gmra.mrb[42].mxu1 %v1269_v54 }
 0x16a   : > { %1613 = vmatprep.mubr.f32.mxu0 %v2037_v55  ;;  %1528 = vmatprep.mubr.f32.mxu1 %v1272_v39 }
 0x16d   : > { %1614 = vmatmul.mubr.f32.gmra.mrb[44].mxu0 %v2036_v56  ;;  %1529 = vmatmul.mubr.f32.gmra.mrb[44].mxu1 %v1271_v58 }
 0x16e   : > { %1618 = vmatprep.mubr.f32.mxu0 %v2039_v59  ;;  %1533 = vmatprep.mubr.f32.mxu1 %v1274_v45 }
 0x171   : > { %1619 = vmatmul.mubr.f32.gmra.mrb[46].mxu0 %v2038_v60  ;;  %1534 = vmatmul.mubr.f32.gmra.mrb[46].mxu1 %v1273_v61 }
 0x218   : > { %v2209_v6 = vpop.f32.mrb[32].mxu0  ;;  %v2165_v7 = vpop.f32.mrb[32].mxu1 }
 0x219   : > { %v2210_v34 = vpop.f32.mrb[33].mxu0  ;;  %v2166_v40 = vpop.f32.mrb[33].mxu1 }
 0x21a   : > { %v2211_v46 = vadd.f32 %v2210_v34, %v2209_v6  ;;  %v2167_v51 = vadd.f32 %v2166_v40, %v2165_v7 }
 0x21c   : > { %v2212_v52 = vpop.f32.mrb[34].mxu0  ;;  %1632 = vrot.lane.b32.xlu0 %v2211_v46, %s2724_s18  ;;  %v2168_v57 = vpop.f32.mrb[34].mxu1 }
 0x21d   : > { %v2213_v62 = vpop.f32.mrb[35].mxu0  ;;  %v2169_v63 = vpop.f32.mrb[35].mxu1 }
 0x21e   : > { %v2214_v0 = vadd.f32 %v2213_v62, %v2212_v52  ;;  %v2170_v1 = vadd.f32 %v2169_v63, %v2168_v57 }
 0x220   : > { %v2215_v2 = vpop.f32.mrb[36].mxu0  ;;  %1634 = vrot.lane.b32.xlu0 %v2214_v0, %s2724_s18  ;;  %v2171_v3 = vpop.f32.mrb[36].mxu1 }
 0x221   : > { %v2216_v4 = vpop.f32.mrb[37].mxu0  ;;  %v2172_v5 = vpop.f32.mrb[37].mxu1 }
 0x222   : > { %v2217_v8 = vadd.f32 %v2216_v4, %v2215_v2  ;;  %v2173_v9 = vadd.f32 %v2172_v5, %v2171_v3 }
 0x224   : > { %v2218_v11 = vpop.f32.mrb[38].mxu0  ;;  %1636 = vrot.lane.b32.xlu0 %v2217_v8, %s2724_s18  ;;  %v2174_v12 = vpop.f32.mrb[38].mxu1 }
 0x225   : > { %v2219_v13 = vpop.f32.mrb[39].mxu0  ;;  %v2175_v14 = vpop.f32.mrb[39].mxu1 }
 0x226   : > { %v2220_v15 = vadd.f32 %v2219_v13, %v2218_v11  ;;  %v2176_v17 = vadd.f32 %v2175_v14, %v2174_v12 }
 0x228   : > { %1638 = vrot.lane.b32.xlu0 %v2220_v15, %s2724_s18 }
 0x238   : > { %v2297_v18 = vpop.f32.mrb[40].mxu0  ;;  %v2253_v19 = vpop.f32.mrb[40].mxu1 }
 0x239   : > { %v2298_v20 = vpop.f32.mrb[41].mxu0  ;;  %v2254_v21 = vpop.f32.mrb[41].mxu1 }
 0x23a   : > { %v2299_v23 = vadd.f32 %v2298_v20, %v2297_v18  ;;  %v3136_v24 = vadd.f32 %v2254_v21, %v2253_v19 }
 0x23c   : > { %v2300_v25 = vpop.f32.mrb[42].mxu0  ;;  %1640 = vrot.lane.b32.xlu1 %v2299_v23, %s2724_s18  ;;  %v2256_v26 = vpop.f32.mrb[42].mxu1 }
 0x23d   : > { %v2301_v27 = vpop.f32.mrb[43].mxu0  ;;  %v2257_v29 = vpop.f32.mrb[43].mxu1 }
 0x23e   : > { %v2302_v30 = vadd.f32 %v2301_v27, %v2300_v25  ;;  %v3139_v31 = vadd.f32 %v2257_v29, %v2256_v26 }
 0x240   : > { %v2303_v32 = vpop.f32.mrb[44].mxu0  ;;  %1642 = vrot.lane.b32.xlu1 %v2302_v30, %s2724_s18  ;;  %v2259_v33 = vpop.f32.mrb[44].mxu1 }
 0x241   : > { %v2304_v35 = vpop.f32.mrb[45].mxu0  ;;  %v2260_v36 = vpop.f32.mrb[45].mxu1 }
 0x242   : > { %v2305_v37 = vadd.f32 %v2304_v35, %v2303_v32  ;;  %v3142_v10 = vadd.f32 %v2260_v36, %v2259_v33 }
 0x244   : > { %v2306_v38 = vpop.f32.mrb[46].mxu0  ;;  %1644 = vrot.lane.b32.xlu1 %v2305_v37, %s2724_s18  ;;  %v2262_v41 = vpop.f32.mrb[46].mxu1 }
 0x245   : > { %v2307_v42 = vpop.f32.mrb[47].mxu0  ;;  %v2263_v43 = vpop.f32.mrb[47].mxu1 }
 0x246   : > { %v2308_v44 = vadd.f32 %v2307_v42, %v2306_v38  ;;  %v3145_v16 = vadd.f32 %v2263_v43, %v2262_v41 }
 0x248   : > { %1646 = vrot.lane.b32.xlu1 %v2308_v44, %s2724_s18  ;;  %s2659_s18 = sshll.u32 %s2725_s9, 4  ;;  %s2660_s18 = int_to_ptr.vmem [resolvable:$false] %s2659_s18 }
 0x249   : > { %s2661_s19 = scalar_lea.vmem %s2660_s18, 2048  ;;  %p2662_p13 = scmp.lt.s32.totalorder %s3190_s24, %s2660_s18 }
 0x24a   : > { %p2663_p0 = scmp.lt.s32.totalorder %s2661_s19, %s2655_s17 }
 0x24c   : > { %p2664_p1 = por %p2663_p0, %p2662_p13 }
 0x24e   : > { %p2665_p2 = pnand %p2664_p1, %p2658_p12 }
 0x28e   : > { %v1633_v48 = vpop.permute.xlu0 %1632 }
 0x28f   : > { %v1657_v22 = vsel %vm1656_vm6, %v2167_v51, %v1633_v48 }
 0x290   : > { %v1667_v49 = vadd.f32 %v3148_v47, %v1657_v22 }
 0x292   : > { %v2040_v50 = vmul.f32 -1.442695, %v1667_v49  ;;  %v1635_v28 = vpop.permute.xlu0 %1634 }
 0x293   : > { %v1658_v53 = vsel %vm1656_vm6, %v2170_v1, %v1635_v28 }
 0x294   : > { %2600 = vpow2.f32 %v2040_v50  ;;  %v1668_v54 = vadd.f32 %v3148_v47, %v1658_v53 }
 0x296   : > { %v2041_v55 = vmul.f32 -1.442695, %v1668_v54  ;;  %v1637_v39 = vpop.permute.xlu0 %1636 }
 0x297   : > { %v1659_v56 = vsel %vm1656_vm6, %v2173_v9, %v1637_v39 }
 0x298   : > { %2602 = vpow2.f32 %v2041_v55  ;;  %v1669_v58 = vadd.f32 %v3148_v47, %v1659_v56 }
 0x29a   : > { %v2042_v59 = vmul.f32 -1.442695, %v1669_v58  ;;  %v1639_v45 = vpop.permute.xlu0 %1638 }
 0x29b   : > { %v1660_v60 = vsel %vm1656_vm6, %v2176_v17, %v1639_v45 }
 0x29c   : > { %2604 = vpow2.f32 %v2042_v59  ;;  %v1670_v61 = vadd.f32 %v3148_v47, %v1660_v60 }
 0x29e   : > { %v2601_v6 = vpop.eup %2600  ;;  %v2043_v7 = vmul.f32 -1.442695, %v1670_v61 }
 0x29f   : > { %v1699_v34 = vadd.f32 1.0, %v2601_v6 }
 0x2a0   : > { %2606 = vpow2.f32 %v2043_v7 }
 0x2a1   : > { %2608 = vrcp.f32 %v1699_v34 }
 0x2a2   : > { %v2603_v40 = vpop.eup %2602 }
 0x2a3   : > { %v1700_v46 = vadd.f32 1.0, %v2603_v40 }
 0x2a5   : > { %2610 = vrcp.f32 %v1700_v46 }
 0x2a6   : > { %v2605_v51 = vpop.eup %2604 }
 0x2a7   : > { %v1701_v52 = vadd.f32 1.0, %v2605_v51 }
 0x2a9   : > { %2612 = vrcp.f32 %v1701_v52 }
 0x2aa   : > { %v2607_v57 = vpop.eup %2606 }
 0x2ab   : > { %v2609_v62 = vpop.eup %2608  ;;  %v1702_v63 = vadd.f32 1.0, %v2607_v57 }
 0x2ac   : > { %1723 = vst [vmem:[%s3161_s21] sm:$0xff] %v2609_v62  ;;  %1731 = vadd.xlane.f32.xlu0 %v2609_v62 }
 0x2ad   : > { %2614 = vrcp.f32 %v1702_v63 }
 0x2ae   : > { %v1641_v0 = vpop.permute.xlu1 %1640 }
 0x2af   : > { %v2611_v1 = vpop.eup %2610  ;;  %v1661_v2 = vsel %vm1656_vm6, %v3136_v24, %v1641_v0 }
 0x2b0   : > { %1724 = vst [vmem:[%s3161_s21 + $0x8] sm:$0xff] %v2611_v1  ;;  %v1671_v3 = vadd.f32 %v3148_v47, %v1661_v2  ;;  %1733 = vadd.xlane.f32.xlu1 %v2611_v1 }
 0x2b2   : > { %v2044_v4 = vmul.f32 -1.442695, %v1671_v3  ;;  %v1643_v5 = vpop.permute.xlu1 %1642 }
 0x2b3   : > { %v2613_v8 = vpop.eup %2612  ;;  %v1662_v9 = vsel %vm1656_vm6, %v3139_v31, %v1643_v5 }
 0x2b4   : > { %1725 = vst [vmem:[%s3161_s21 + $0x10] sm:$0xff] %v2613_v8  ;;  %2616 = vpow2.f32 %v2044_v4  ;;  %v1672_v11 = vadd.f32 %v3148_v47, %v1662_v9  ;;  %1735 = vadd.xlane.f32.xlu1 %v2613_v8 }
 0x2b6   : > { %v2045_v12 = vmul.f32 -1.442695, %v1672_v11  ;;  %v1645_v13 = vpop.permute.xlu1 %1644 }
 0x2b7   : > { %v2615_v14 = vpop.eup %2614  ;;  %v1663_v15 = vsel %vm1656_vm6, %v3142_v10, %v1645_v13 }
 0x2b8   : > { %1726 = vst [vmem:[%s3161_s21 + $0x18] sm:$0xff] %v2615_v14  ;;  %2618 = vpow2.f32 %v2045_v12  ;;  %v1673_v17 = vadd.f32 %v3148_v47, %v1663_v15  ;;  %1737 = vadd.xlane.f32.xlu1 %v2615_v14 }
 0x2ba   : > { %v2046_v18 = vmul.f32 -1.442695, %v1673_v17  ;;  %v1647_v19 = vpop.permute.xlu1 %1646 }
 0x2bb   : > { %v1664_v20 = vsel %vm1656_vm6, %v3145_v16, %v1647_v19 }
 0x2bc   : > { %2620 = vpow2.f32 %v2046_v18  ;;  %v1674_v21 = vadd.f32 %v3148_v47, %v1664_v20 }
 0x2be   : > { %v2617_v23 = vpop.eup %2616  ;;  %v2047_v24 = vmul.f32 -1.442695, %v1674_v21 }
 0x2bf   : > { %v1703_v25 = vadd.f32 1.0, %v2617_v23 }
 0x2c0   : > { %2622 = vpow2.f32 %v2047_v24 }
 0x2c1   : > { %2624 = vrcp.f32 %v1703_v25 }
 0x2c2   : > { %v2619_v26 = vpop.eup %2618 }
 0x2c3   : > { %v1704_v27 = vadd.f32 1.0, %v2619_v26 }
 0x2c5   : > { %2626 = vrcp.f32 %v1704_v27 }
 0x2c6   : > { %v2621_v29 = vpop.eup %2620 }
 0x2c7   : > { %v1705_v30 = vadd.f32 1.0, %v2621_v29 }
 0x2c9   : > { %2628 = vrcp.f32 %v1705_v30 }
 0x2ca   : > { %v2623_v31 = vpop.eup %2622 }
 0x2cb   : > { %v2625_v32 = vpop.eup %2624  ;;  %v1706_v33 = vadd.f32 1.0, %v2623_v31 }
 0x2cc   : > { %1727 = vst [vmem:[%s3161_s21 + $0x20] sm:$0xff] %v2625_v32  ;;  %1739 = vadd.xlane.f32.xlu0 %v2625_v32 }
 0x2cd   : > { %2630 = vrcp.f32 %v1706_v33 }
 0x2cf   : > { %v2627_v35 = vpop.eup %2626 }
 0x2d0   : > { %1728 = vst [vmem:[%s3161_s21 + $0x28] sm:$0xff] %v2627_v35  ;;  %1741 = vadd.xlane.f32.xlu0 %v2627_v35 }
 0x2d3   : > { %v2629_v36 = vpop.eup %2628 }
 0x2d4   : > { %1729 = vst [vmem:[%s3161_s21 + $0x30] sm:$0xff] %v2629_v36  ;;  %1743 = vadd.xlane.f32.xlu0 %v2629_v36 }
 0x2d7   : > { %v2631_v37 = vpop.eup %2630 }
 0x2d8   : > { %1730 = vst [vmem:[%s3161_s21 + $0x38] sm:$0xff] %v2631_v37  ;;  %1745 = vadd.xlane.f32.xlu0 %v2631_v37 }
 0x2d9   : > { %2668 = shalt.err (!%p2665_p2)
}
 0x2da   : > { %s2669_s20 = scalar_lea.hbm %s3188_s12, 1024  ;;  %s2673_s23 = scalar_lea.hbm %s3252_s7, 2048 }
 0x2db   : > { %p2670_p3 = scmp.ne.s32.totalorder %s3188_s12, %s2669_s20  ;;  %p2674_p8 = scmp.lt.u32.totalorder %s3188_s12, %s3252_s7 }
 0x2dc   : > { %p2675_p10 = scmp.lt.u32.totalorder %s2673_s23, %s2669_s20  ;;  %p2677_p11 = scmp.lt.u32.totalorder %s2669_s20, %s3188_s12 }
 0x2dd   : > { %p2671_p4 = pnand %p2670_p3, %p2811_p5 }
 0x2de   : > { %p2676_p9 = por %p2675_p10, %p2674_p8 }
 0x2df   : > { %p2672_p7 = pneg %p2671_p4 }
 0x2e0   : > { %p2678_p12 = por %p2677_p11, %p2676_p9 }
 0x2e2   : > { %p2679_p13 = pnand %p2678_p12, %p2672_p7 }
 0x2e4   : > { %2682 = shalt.err (!%p2679_p13)
}
 0x2e5   : > { %s2726_s17 = smov 128   ;;  %s2727_s9 = smov 8   ;;  %vm1787_vm7 = vcmask 0  }
 0x2e6   : > { %2551 = dma.vmem_to_hbm [thread:$0]  (%p2811_p5), %s3190_s24, 1024, %s3188_s12, %s3194_s13, %s2726_s17, %s2726_s17, %s2727_s9  }
 0x2e7   : > { %s3218_s18 = sld [smem:[#allocation2 + $0x1]]  ;;  %s3220_s19 = sld [smem:[#allocation2 + $0x2]] }
 0x2e8   : > { %s409_s12 = scalar_lea.vmem %s3253_s8, %s3262_s25 }
 0x2ed   : > { %v1768_v53 = vstv %s3218_s18  ;;  %v1772_v55 = vstv %s3220_s19 }
 0x339   : > { %v1732_v38 = vpop.xlane.xlu0 %1731 }
 0x33d   : > { %v1734_v10 = vpop.xlane.xlu1 %1733 }
 0x33e   : > { %v1747_v42 = vadd.f32 %v1734_v10, %v1732_v38 }
 0x341   : > { %v1736_v41 = vpop.xlane.xlu1 %1735 }
 0x342   : > { %v1748_v43 = vadd.f32 %v1747_v42, %v1736_v41 }
 0x345   : > { %v1738_v44 = vpop.xlane.xlu1 %1737 }
 0x346   : > { %v1749_v16 = vadd.f32 %v1748_v43, %v1738_v44 }
 0x348   : > { %v1750_v47 = vrot.slane %v1749_v16, 4 }
 0x34a   : > { %v1751_v48 = vadd.f32 %v1750_v47, %v1749_v16 }
 0x34c   : > { %v1752_v22 = vrot.slane %v1751_v48, 2 }
 0x34e   : > { %v1753_v49 = vadd.f32 %v1752_v22, %v1751_v48 }
 0x350   : > { %v1754_v50 = vrot.slane %v1753_v49, 1 }
 0x352   : > { %v1755_v28 = vadd.f32 %v1754_v50, %v1753_v49 }
 0x354   : > { %v1765_v54 = vmul.f32 0.00024414063, %v1755_v28 }
 0x356   : > { %v1769_v39 = vmul.f32 %v1768_v53, %v1765_v54 }
 0x358   : > { %v1773_v56 = vadd.f32 %v1772_v55, %v1769_v39 }
 0x359   : > { %v1740_v58 = vpop.xlane.xlu0 %1739 }
 0x35a   : > { %v2050_v59 = vmul.f32 -1.442695, %v1773_v56 }
 0x35c   : > { %2632 = vpow2.f32 %v2050_v59 }
 0x35d   : > { %v1742_v45 = vpop.xlane.xlu0 %1741 }
 0x35e   : > { %v1756_v61 = vadd.f32 %v1742_v45, %v1740_v58 }
 0x361   : > { %v1744_v60 = vpop.xlane.xlu0 %1743 }
 0x362   : > { %v1757_v6 = vadd.f32 %v1756_v61, %v1744_v60 }
 0x365   : > { %v1746_v7 = vpop.xlane.xlu0 %1745 }
 0x366   : > { %v2633_v34 = vpop.eup %2632  ;;  %v1758_v40 = vadd.f32 %v1757_v6, %v1746_v7 }
 0x367   : > { %v1781_v46 = vadd.f32 1.0, %v2633_v34 }
 0x368   : > { %v1759_v51 = vrot.slane %v1758_v40, 4 }
 0x369   : > { %2634 = vrcp.f32 %v1781_v46 }
 0x36a   : > { %v1760_v52 = vadd.f32 %v1759_v51, %v1758_v40 }
 0x36c   : > { %v1761_v57 = vrot.slane %v1760_v52, 2 }
 0x36e   : > { %v1762_v62 = vadd.f32 %v1761_v57, %v1760_v52 }
 0x370   : > { %v1763_v63 = vrot.slane %v1762_v62, 1 }
 0x372   : > { %v1764_v0 = vadd.f32 %v1763_v63, %v1762_v62 }
 0x373   : > { %v2635_v1 = vpop.eup %2634 }
 0x374   : > { %1788 = vst.msk [vmem:[%s409_s12] sm:$0x1] %vm1787_vm7, %v2635_v1  ;;  %v1766_v2 = vmul.f32 0.00024414063, %v1764_v0 }
 0x376   : > { %v1770_v3 = vmul.f32 %v1768_v53, %v1766_v2 }
 0x378   : > { %v1774_v4 = vadd.f32 %v1772_v55, %v1770_v3 }
 0x37a   : > { %v2051_v5 = vmul.f32 -1.442695, %v1774_v4 }
 0x37c   : > { %2636 = vpow2.f32 %v2051_v5 }
 0x386   : > { %v2637_v8 = vpop.eup %2636 }
 0x387   : > { %v1782_v9 = vadd.f32 1.0, %v2637_v8 }
 0x389   : > { %2638 = vrcp.f32 %v1782_v9 }
 0x393   : > { %v2639_v11 = vpop.eup %2638 }
 0x394   : > { %1789 = vst.msk [vmem:[%s409_s12 + $0x1] sm:$0x1] %vm1787_vm7, %v2639_v11 }
 0x395 PF: > { %p2563_p5 = scmp.ge.s32.totalorder %s2721_s30, 2  ;;  %s1828_s25 = sand.u32 1, %s2709_s27  }
 0x396   : > { %s1829_s13 = scalar_lea.sflag [#allocation3], %s1828_s25 }
 0x397   : > { %p2558_p0 = pnand %p2563_p5, %p2815_p6 }
 0x399   : > { %2704 = dma.done.wait (!%p2558_p0), %s1829_s13, 1024  }
 0x39a   : > { %2706 = vsyncadd (!%p2558_p0), %s1829_s13, 4294966272  ;;  %p20_p1 = scmp.ge.s32.totalorder %s2798_s11, 4   ;;  %s3257_s27 = smov %s2713_s28 }
 0x39b   : > { %s3258_s28 = smov %s2717_s29  ;;  %s3259_s29 = smov %s2809_s14 }
 0x39c   : > { %s3260_s30 = smov %s2798_s11  ;;  %22 = sbr.rel (!%p20_p1) target bundleno = 4 (0x4), region = 113 }
 0x3a3   :  { %1841 = vsyncpa [#allocation3], 1 }
 0x3a4   :  { %1843 = vsyncpa [#allocation3 + $0x1], 1 }
 0x3a5   :  { %1844 = vsyncpa [#allocation4], 1 }
 0x3a6   :  { %1846 = vsyncpa [#allocation4 + $0x1], 1 }

</bundles_post_ra>
